<compile_context>
chip_gen: v7x
topology: tpu7x:2x2x1
jax: 0.10.0
libtpu: 0.0.40
codegen_flags: <defaults>
</compile_context>

<pallas_src>
import jax
import jax.numpy as jnp
from jax.experimental import pallas as pl
from jax.experimental.pallas import tpu as pltpu


def _log_sigmoid(x):
    # stable log(sigmoid(x)) = -softplus(-x) = -(max(-x,0) + log1p(exp(-|x|)))
    return -(jnp.maximum(-x, 0.0) + jnp.log1p(jnp.exp(-jnp.abs(x))))


def dice_kernel(mats_ref, u_ref, i_ref, j_ref, w_ref, out_ref, acc_ref):
    """One batch tile, batch on the lane axis.

    mats_ref : (24, D) step-invariant reduction matrices (resident, fetched once)
        rows  0..7  M8 : BPR dot selectors (full dim, first half, -second, +second)
        rows  8..15 S8 : row 4 = sign (+1 first half, -1 second half)
        rows 16..23 R8 : row 5 = reg_scale * ones
    u/i/j_ref : (D, TB) gathered embeddings, transposed (batch on lanes)
    w_ref     : (8, TB) per-row scalars
        row 0: 1          row 1: pop mask   row 2: pop mask   row 3: 1 - pop mask
        row 4: wu (dedup) row 5: wi         row 6: wj         row 7: 0
    acc_ref   : (8, TB) accumulator; rows 0..3 = click/interest/pop1/pop2,
                row 4 = discrepancy, row 5 = reg.  Finalize lane-reduces into
                out_ref (8, 128).
    """
    step = pl.program_id(1)

    @pl.when(step == 0)
    def _():
        acc_ref[...] = jnp.zeros_like(acc_ref)

    M8 = mats_ref[0:8, :]
    S8 = mats_ref[8:16, :]
    R8 = mats_ref[16:24, :]

    u = u_ref[...]
    iv = i_ref[...]
    jv = j_ref[...]
    w = w_ref[...]

    # rows 4..6 of w carry dedup weights, not loss weights -> zero them here
    row = jax.lax.broadcasted_iota(jnp.int32, (8, 1), 0)
    loss_w = jnp.where(row < 4, w, 0.0)

    wu = w[4:5, :]
    wi = w[5:6, :]
    wj = w[6:7, :]

    # ---- all four BPR-style dot-product differences via ONE MXU matmul ----
    diff_prod = u * (iv - jv)                                           # (D, TB)
    dots = jnp.dot(M8, diff_prod, preferred_element_type=jnp.float32)   # (8, TB)
    z = _log_sigmoid(dots)           # one EUP pass covers all four losses

    # ---- discrepancy over unique rows (dedup-as-weights), lands in row 4 ----
    combo = wu * u + wi * iv + wj * jv                                  # (D, TB)
    aux_disc = jnp.dot(S8, combo, preferred_element_type=jnp.float32)   # (8, TB)

    # ---- reg loss (padding rows are zero vectors), lands in row 5 ----
    sq = u * u + iv * iv + jv * jv                                      # (D, TB)
    aux_reg = jnp.dot(R8, sq, preferred_element_type=jnp.float32)       # (8, TB)

    acc_ref[...] += aux_reg - aux_disc - loss_w * z

    @pl.when(step == pl.num_programs(1) - 1)
    def _():
        totals = jnp.sum(acc_ref[...], axis=1, keepdims=True)           # (8, 1)
        out_ref[...] = jnp.broadcast_to(totals, out_ref.shape)


def _first_occurrence(idx):
    """1.0 at exactly one representative of each distinct index, else 0.0.

    Sort-based (O(B log B)); weighted sums with these weights equal sums over
    torch .unique(idx)."""
    n = idx.shape[0]
    order = jnp.argsort(idx)
    s = idx[order]
    first_sorted = jnp.concatenate(
        [jnp.ones((1,), jnp.bool_), s[1:] != s[:-1]])
    return jnp.zeros((n,), jnp.float32).at[order].set(
        first_sorted.astype(jnp.float32))


def _round_up(x, m):
    return ((x + m - 1) // m) * m


def dice_forward(user_emb, item_emb, item_popularity,
                 user_idx, item_i_idx, item_j_idx,
                 *, batch_tile=2048, num_cores=2):
    B = user_idx.shape[0]
    D = user_emb.shape[1]
    H = D // 2
    f32 = jnp.float32

    # ---- glue: embedding gathers (nn.Embedding lookups), batch on lane axis ----
    # TODO(synk): for D >= ~128 move the gather into the kernel (scalar-prefetched
    # indices + manual DMA) to avoid re-reading the gathered rows from HBM.
    u_t = user_emb[user_idx].T.astype(f32)        # (D, B)
    i_t = item_emb[item_i_idx].T.astype(f32)
    j_t = item_emb[item_j_idx].T.astype(f32)

    # glue: pop_relation (PyTorch computes this on CPU with numpy)
    mask = (item_popularity[item_i_idx] > item_popularity[item_j_idx]).astype(f32)

    # glue: sort-based first-occurrence weights replace the torch .unique() calls
    wu = _first_occurrence(user_idx)
    wi = _first_occurrence(item_i_idx)
    wj = _first_occurrence(item_j_idx)

    ones_b = jnp.ones((B,), f32)
    w8 = jnp.stack([ones_b, mask, mask, 1.0 - mask,
                    wu, wi, wj, jnp.zeros((B,), f32)], axis=0)       # (8, B)

    # ---- step-invariant reduction matrices (hoisted out of the kernel body) ----
    reg_scale = 0.5 / float(B)
    fh = (jnp.arange(D) < H).astype(f32)
    sh = 1.0 - fh
    zD = jnp.zeros((D,), f32)
    oD = jnp.ones((D,), f32)
    M8 = jnp.stack([oD, fh, -sh, sh, zD, zD, zD, zD], axis=0)        # (8, D)
    S8 = jnp.stack([zD, zD, zD, zD, fh - sh, zD, zD, zD], axis=0)    # (8, D)
    R8 = jnp.stack([zD, zD, zD, zD, zD, reg_scale * oD, zD, zD], axis=0)
    mats = jnp.concatenate([M8, S8, R8], axis=0)                     # (24, D)

    # ---- tiling: batch is the lane axis, so tiles are multiples of 128 ----
    tb = _round_up(min(batch_tile, _round_up(B, 128)), 128)
    n_tiles = -(-B // tb)
    shards = num_cores if n_tiles >= num_cores else 1
    n_steps = -(-n_tiles // shards)
    b_pad = shards * n_steps * tb

    if b_pad != B:
        pad = ((0, 0), (0, b_pad - B))
        u_t = jnp.pad(u_t, pad)
        i_t = jnp.pad(i_t, pad)
        j_t = jnp.pad(j_t, pad)
        w8 = jnp.pad(w8, pad)

    # VMEM budget: double-buffered (3 embeddings + weights) + accumulator + slack
    step_bytes = 4 * (3 * D + 8) * tb
    vmem_limit = int(min(64 * 1024 * 1024,
                         max(16 * 1024 * 1024, 4 * step_bytes + (1 << 20))))

    # NOTE: if DMA is still exposed at large D, add pipeline_mode=pl.Buffered(3)
    # to the three embedding BlockSpecs.
    emb_spec = pl.BlockSpec((D, tb), lambda c, s: (0, c * n_steps + s))

    out = pl.pallas_call(
        dice_kernel,
        out_shape=jax.ShapeDtypeStruct((shards * 8, 128), jnp.float32),
        grid_spec=pltpu.PrefetchScalarGridSpec(
            num_scalar_prefetch=0,
            grid=(shards, n_steps),
            in_specs=[pl.BlockSpec((24, D), lambda c, s: (0, 0)),
                      emb_spec, emb_spec, emb_spec,
                      pl.BlockSpec((8, tb), lambda c, s: (0, c * n_steps + s))],
            out_specs=pl.BlockSpec((8, 128), lambda c, s: (c, 0)),
            scratch_shapes=[pltpu.VMEM((8, tb), jnp.float32)]),
        compiler_params=pltpu.CompilerParams(
            dimension_semantics=("parallel", "arbitrary"),
            vmem_limit_bytes=vmem_limit),
    )(mats, u_t, i_t, j_t, w8)

    totals = out.reshape(shards, 8, 128)[:, :, 0].sum(axis=0)        # (8,)
    # (loss_click, loss_interest, loss_popularity_1, loss_popularity_2,
    #  loss_discrepancy, reg_loss)
    return tuple(totals[k] for k in range(6))


def dice_reference(user_emb, item_emb, item_popularity, uidx, iidx, jidx):
    """Pure-JAX mirror of the PyTorch forward (independent of the kernel path)."""
    H = user_emb.shape[1] // 2
    B = uidx.shape[0]
    u = user_emb[uidx]
    iv = item_emb[iidx]
    jv = item_emb[jidx]

    def logsig(x):
        return jnp.log(jax.nn.sigmoid(x))

    reg = 0.5 * ((u ** 2).sum() + (iv ** 2).sum() + (jv ** 2).sum()) / B
    click = -logsig((u * iv).sum(-1) - (u * jv).sum(-1)).sum()

    def uniq_sum(emb, idx):
        rows = emb[jnp.unique(idx)]
        return rows[:, :H].sum() - rows[:, H:].sum()

    disc = -(uniq_sum(user_emb, uidx) + uniq_sum(item_emb, iidx)
             + uniq_sum(item_emb, jidx))

    m = (item_popularity[iidx] > item_popularity[jidx]).astype(jnp.float32)
    pi1 = (u[:, :H] * iv[:, :H]).sum(-1)
    pj1 = (u[:, :H] * jv[:, :H]).sum(-1)
    pi2 = (u[:, H:] * iv[:, H:]).sum(-1)
    pj2 = (u[:, H:] * jv[:, H:]).sum(-1)
    interest = -(m * logsig(pi1 - pj1)).sum()
    pop1 = -(m * logsig(pj2 - pi2)).sum()
    pop2 = -((1.0 - m) * logsig(pi2 - pj2)).sum()
    return click, interest, pop1, pop2, disc, reg


if __name__ == "__main__":
    key = jax.random.PRNGKey(0)
    k_u, k_i, k_pop, k_uid, k_iid, k_jid = jax.random.split(key, 6)

    NUM_USERS, NUM_ITEMS, EMBED_DIM, BATCH = 16, 24, 32, 8

    # deterministic "nn.init.normal_(std=0.01)" parameter init
    user_emb = 0.01 * jax.random.normal(k_u, (NUM_USERS, EMBED_DIM), jnp.float32)
    item_emb = 0.01 * jax.random.normal(k_i, (NUM_ITEMS, EMBED_DIM), jnp.float32)
    item_popularity = jax.random.uniform(k_pop, (NUM_ITEMS,), jnp.float32)

    user_idx = jax.random.randint(k_uid, (BATCH,), 0, NUM_USERS, jnp.int32)
    item_i_idx = jax.random.randint(k_iid, (BATCH,), 0, NUM_ITEMS, jnp.int32)
    item_j_idx = jax.random.randint(k_jid, (BATCH,), 0, NUM_ITEMS, jnp.int32)

    losses = dice_forward(user_emb, item_emb, item_popularity,
                          user_idx, item_i_idx, item_j_idx)
    losses = jax.block_until_ready(losses)

    ref = dice_reference(user_emb, item_emb, item_popularity,
                         user_idx, item_i_idx, item_j_idx)
    for got, want in zip(losses, ref):
        assert bool(jnp.isfinite(got))
        assert bool(jnp.allclose(got, want, rtol=1e-3, atol=1e-4)), (got, want)
    print("KERNEL_OK")
</pallas_src>

<mosaic_0001>
module attributes {stable_mosaic.version = 11 : i64} {
  func.func @dice_kernel(%arg0: i32, %arg1: i32, %arg2: memref<24x32xf32, #tpu.memory_space<vmem>>, %arg3: memref<32x128xf32, #tpu.memory_space<vmem>>, %arg4: memref<32x128xf32, #tpu.memory_space<vmem>>, %arg5: memref<32x128xf32, #tpu.memory_space<vmem>>, %arg6: memref<8x128xf32, #tpu.memory_space<vmem>>, %arg7: memref<8x128xf32, #tpu.memory_space<vmem>>, %arg8: memref<8x128xf32, #tpu.memory_space<vmem>>) attributes {dimension_semantics = [#tpu.dimension_semantics<parallel>, #tpu.dimension_semantics<arbitrary>], iteration_bounds = array<i64: 1, 1>, scalar_prefetch = 0 : i64, scratch_operands = 1 : i64, tpu.core_type = #tpu.core_type<tc>, window_params = [{pipeline_mode = #tpu.pipeline_mode<synchronous>, transform_indices = @transform_0, window_bounds = array<i64: 24, 32>}, {transform_indices = @transform_1, window_bounds = array<i64: 32, 128>}, {transform_indices = @transform_2, window_bounds = array<i64: 32, 128>}, {transform_indices = @transform_3, window_bounds = array<i64: 32, 128>}, {transform_indices = @transform_4, window_bounds = array<i64: 8, 128>}, {transform_indices = @transform_5, window_bounds = array<i64: 8, 128>}]} {
    %c0_i32 = arith.constant 0 : i32
    %0 = arith.cmpi eq, %arg1, %c0_i32 : i32
    %1 = arith.extui %0 : i1 to i32
    %c0_i32_0 = arith.constant 0 : i32
    %2 = arith.cmpi ne, %1, %c0_i32_0 : i32
    scf.if %2 {
      %cst_25 = arith.constant 0.000000e+00 : f32
      %59 = vector.broadcast %cst_25 : f32 to vector<8x128xf32>
      %c0_26 = arith.constant 0 : index
      %c0_27 = arith.constant 0 : index
      %60 = vector.load %arg8[%c0_26, %c0_27] : memref<8x128xf32, #tpu.memory_space<vmem>>, vector<8x128xf32>
      tpu.vector_store %arg8[%c0_26, %c0_27], %59 {strides = array<i32>} : memref<8x128xf32, #tpu.memory_space<vmem>>, vector<8x128xf32>,
    } else {
    }
    %c0 = arith.constant 0 : index
    %c0_1 = arith.constant 0 : index
    %3 = vector.load %arg2[%c0, %c0_1] : memref<24x32xf32, #tpu.memory_space<vmem>>, vector<8x32xf32>
    %c8 = arith.constant 8 : index
    %c0_2 = arith.constant 0 : index
    %4 = vector.load %arg2[%c8, %c0_2] : memref<24x32xf32, #tpu.memory_space<vmem>>, vector<8x32xf32>
    %c16 = arith.constant 16 : index
    %c0_3 = arith.constant 0 : index
    %5 = vector.load %arg2[%c16, %c0_3] : memref<24x32xf32, #tpu.memory_space<vmem>>, vector<8x32xf32>
    %c0_4 = arith.constant 0 : index
    %c0_5 = arith.constant 0 : index
    %6 = vector.load %arg3[%c0_4, %c0_5] : memref<32x128xf32, #tpu.memory_space<vmem>>, vector<32x128xf32>
    %c0_6 = arith.constant 0 : index
    %c0_7 = arith.constant 0 : index
    %7 = vector.load %arg4[%c0_6, %c0_7] : memref<32x128xf32, #tpu.memory_space<vmem>>, vector<32x128xf32>
    %c0_8 = arith.constant 0 : index
    %c0_9 = arith.constant 0 : index
    %8 = vector.load %arg5[%c0_8, %c0_9] : memref<32x128xf32, #tpu.memory_space<vmem>>, vector<32x128xf32>
    %c0_10 = arith.constant 0 : index
    %c0_11 = arith.constant 0 : index
    %9 = vector.load %arg6[%c0_10, %c0_11] : memref<8x128xf32, #tpu.memory_space<vmem>>, vector<8x128xf32>
    %10 = tpu.iota {dimensions = array<i32: 0>} : vector<8x1xi32>
    %c4_i32 = arith.constant 4 : i32
    %11 = vector.broadcast %c4_i32 : i32 to vector<8x1xi32>
    %12 = arith.cmpi slt, %10, %11 : vector<8x1xi32>
    %cst = arith.constant 0.000000e+00 : f32
    %13 = vector.shape_cast %12 : vector<8x1xi1> to vector<8x1xi1>
    %14 = vector.broadcast %13 : vector<8x1xi1> to vector<8x128xi1>
    %15 = vector.broadcast %cst : f32 to vector<8x128xf32>
    %16 = arith.select %14, %9, %15 : vector<8x128xi1>, vector<8x128xf32>
    %17 = vector.extract_strided_slice %9 {offsets = [4, 0], sizes = [1, 128], strides = [1, 1]} : vector<8x128xf32> to vector<1x128xf32>
    %18 = vector.extract_strided_slice %9 {offsets = [5, 0], sizes = [1, 128], strides = [1, 1]} : vector<8x128xf32> to vector<1x128xf32>
    %19 = vector.extract_strided_slice %9 {offsets = [6, 0], sizes = [1, 128], strides = [1, 1]} : vector<8x128xf32> to vector<1x128xf32>
    %20 = arith.subf %7, %8 : vector<32x128xf32>
    %21 = arith.mulf %6, %20 : vector<32x128xf32>
    %cst_12 = arith.constant dense<0.000000e+00> : vector<8x128xf32>
    %22 = tpu.matmul %3, %21, %cst_12 {dimension_numbers = #tpu.dot_dimension_numbers<[1], [0], [0], [1], [0, 0, 1, 1], [], []>} : vector<8x32xf32>, vector<32x128xf32>, vector<8x128xf32> -> vector<8x128xf32>
    %cst_13 = arith.constant 0.000000e+00 : f32
    %23 = vector.broadcast %cst_13 : f32 to vector<8x128xf32>
    %24 = arith.subf %23, %22 : vector<8x128xf32>
    %cst_14 = arith.constant 0.000000e+00 : f32
    %25 = vector.broadcast %cst_14 : f32 to vector<8x128xf32>
    %26 = arith.maximumf %24, %25 : vector<8x128xf32>
    %27 = math.absf %22 : vector<8x128xf32>
    %cst_15 = arith.constant 0.000000e+00 : f32
    %28 = vector.broadcast %cst_15 : f32 to vector<8x128xf32>
    %29 = arith.subf %28, %27 : vector<8x128xf32>
    %30 = math.exp %29 : vector<8x128xf32>
    %31 = math.log1p %30 : vector<8x128xf32>
    %32 = arith.addf %26, %31 : vector<8x128xf32>
    %cst_16 = arith.constant 0.000000e+00 : f32
    %33 = vector.broadcast %cst_16 : f32 to vector<8x128xf32>
    %34 = arith.subf %33, %32 : vector<8x128xf32>
    %35 = vector.broadcast %17 : vector<1x128xf32> to vector<32x128xf32>
    %36 = arith.mulf %35, %6 : vector<32x128xf32>
    %37 = vector.broadcast %18 : vector<1x128xf32> to vector<32x128xf32>
    %38 = arith.mulf %37, %7 : vector<32x128xf32>
    %39 = arith.addf %36, %38 : vector<32x128xf32>
    %40 = vector.broadcast %19 : vector<1x128xf32> to vector<32x128xf32>
    %41 = arith.mulf %40, %8 : vector<32x128xf32>
    %42 = arith.addf %39, %41 : vector<32x128xf32>
    %cst_17 = arith.constant dense<0.000000e+00> : vector<8x128xf32>
    %43 = tpu.matmul %4, %42, %cst_17 {dimension_numbers = #tpu.dot_dimension_numbers<[1], [0], [0], [1], [0, 0, 1, 1], [], []>} : vector<8x32xf32>, vector<32x128xf32>, vector<8x128xf32> -> vector<8x128xf32>
    %44 = arith.mulf %6, %6 : vector<32x128xf32>
    %45 = arith.mulf %7, %7 : vector<32x128xf32>
    %46 = arith.addf %44, %45 : vector<32x128xf32>
    %47 = arith.mulf %8, %8 : vector<32x128xf32>
    %48 = arith.addf %46, %47 : vector<32x128xf32>
    %cst_18 = arith.constant dense<0.000000e+00> : vector<8x128xf32>
    %49 = tpu.matmul %5, %48, %cst_18 {dimension_numbers = #tpu.dot_dimension_numbers<[1], [0], [0], [1], [0, 0, 1, 1], [], []>} : vector<8x32xf32>, vector<32x128xf32>, vector<8x128xf32> -> vector<8x128xf32>
    %c0_19 = arith.constant 0 : index
    %c0_20 = arith.constant 0 : index
    %50 = vector.load %arg8[%c0_19, %c0_20] : memref<8x128xf32, #tpu.memory_space<vmem>>, vector<8x128xf32>
    %51 = arith.subf %49, %43 : vector<8x128xf32>
    %52 = arith.mulf %16, %34 : vector<8x128xf32>
    %53 = arith.subf %51, %52 : vector<8x128xf32>
    %54 = arith.addf %50, %53 : vector<8x128xf32>
    %c0_21 = arith.constant 0 : index
    %c0_22 = arith.constant 0 : index
    %55 = vector.load %arg8[%c0_21, %c0_22] : memref<8x128xf32, #tpu.memory_space<vmem>>, vector<8x128xf32>
    tpu.vector_store %arg8[%c0_21, %c0_22], %54 {strides = array<i32>} : memref<8x128xf32, #tpu.memory_space<vmem>>, vector<8x128xf32>,
    %c0_i32_23 = arith.constant 0 : i32
    %56 = arith.cmpi eq, %arg1, %c0_i32_23 : i32
    %57 = arith.extui %56 : i1 to i32
    %c0_i32_24 = arith.constant 0 : i32
    %58 = arith.cmpi ne, %57, %c0_i32_24 : i32
    scf.if %58 {
      %c0_25 = arith.constant 0 : index
      %c0_26 = arith.constant 0 : index
      %59 = vector.load %arg8[%c0_25, %c0_26] : memref<8x128xf32, #tpu.memory_space<vmem>>, vector<8x128xf32>
      %cst_27 = arith.constant dense<0.000000e+00> : vector<8xf32>
      %60 = vector.multi_reduction <add>, %59, %cst_27 [1] : vector<8x128xf32> to vector<8xf32>
      %61 = vector.shape_cast %60 : vector<8xf32> to vector<8x1xf32>
      %62 = vector.shape_cast %61 : vector<8x1xf32> to vector<8x1xf32>
      %63 = vector.broadcast %62 : vector<8x1xf32> to vector<8x128xf32>
      %c0_28 = arith.constant 0 : index
      %c0_29 = arith.constant 0 : index
      %64 = vector.load %arg7[%c0_28, %c0_29] : memref<8x128xf32, #tpu.memory_space<vmem>>, vector<8x128xf32>
      tpu.vector_store %arg7[%c0_28, %c0_29], %63 {strides = array<i32>} : memref<8x128xf32, #tpu.memory_space<vmem>>, vector<8x128xf32>,
    } else {
    }
    return
  }
  func.func @transform_0(%arg0: i32, %arg1: i32) -> (i32, i32) {
    %c0_i32 = arith.constant 0 : i32
    %c0_i32_0 = arith.constant 0 : i32
    %c0_i32_1 = arith.constant 0 : i32
    return %c0_i32, %c0_i32_0 : i32, i32
  }
  func.func @transform_1(%arg0: i32, %arg1: i32) -> (i32, i32) {
    %c1_i32 = arith.constant 1 : i32
    %0 = arith.muli %arg0, %c1_i32 : i32
    %1 = arith.addi %0, %arg1 : i32
    %c0_i32 = arith.constant 0 : i32
    %c0_i32_0 = arith.constant 0 : i32
    return %c0_i32, %1 : i32, i32
  }
  func.func @transform_2(%arg0: i32, %arg1: i32) -> (i32, i32) {
    %c1_i32 = arith.constant 1 : i32
    %0 = arith.muli %arg0, %c1_i32 : i32
    %1 = arith.addi %0, %arg1 : i32
    %c0_i32 = arith.constant 0 : i32
    %c0_i32_0 = arith.constant 0 : i32
    return %c0_i32, %1 : i32, i32
  }
  func.func @transform_3(%arg0: i32, %arg1: i32) -> (i32, i32) {
    %c1_i32 = arith.constant 1 : i32
    %0 = arith.muli %arg0, %c1_i32 : i32
    %1 = arith.addi %0, %arg1 : i32
    %c0_i32 = arith.constant 0 : i32
    %c0_i32_0 = arith.constant 0 : i32
    return %c0_i32, %1 : i32, i32
  }
  func.func @transform_4(%arg0: i32, %arg1: i32) -> (i32, i32) {
    %c1_i32 = arith.constant 1 : i32
    %0 = arith.muli %arg0, %c1_i32 : i32
    %1 = arith.addi %0, %arg1 : i32
    %c0_i32 = arith.constant 0 : i32
    %c0_i32_0 = arith.constant 0 : i32
    return %c0_i32, %1 : i32, i32
  }
  func.func @transform_5(%arg0: i32, %arg1: i32) -> (i32, i32) {
    %c0_i32 = arith.constant 0 : i32
    %c0_i32_0 = arith.constant 0 : i32
    return %arg0, %c0_i32 : i32, i32
  }
}

</mosaic_0001>

<bundles_post_ra>
// kernel: tpu_custom_call.1
= control target key start
LH: loop header
LB: loop body
LE: loop exit
PB: predicated region body
PF: predicated region fallthrough
CT: control target
= control target key end

     0   :  { %10 = vsyncpa [#allocation4], 0  ;;  %s822_s0 = inlined_call_operand.hbm [shape: f32[24,32], index: 0, kind: input, shape index: {}]   ;;  %s823_s1 = inlined_call_operand.hbm [shape: f32[32,128], index: 1, kind: input, shape index: {}]   ;;  %s824_s2 = inlined_call_operand.hbm [shape: f32[32,128], index: 2, kind: input, shape index: {}]   ;;  %s825_s3 = inlined_call_operand.hbm [shape: f32[32,128], index: 3, kind: input, shape index: {}]   ;;  %s826_s4 = inlined_call_operand.vmem [shape: f32[8,128], index: 4, kind: input, shape index: {}]   ;;  %s827_s5 = inlined_call_operand.hbm [shape: f32[8,128], index: 5, kind: output, shape index: {}]  }
   0x1   :  { %11 = vsyncpa [#allocation7], 0 }
   0x2   :  { %12 = vsyncpa [#allocation10], 0 }
   0x3   :  { %13 = vsyncpa [#allocation5], 0  ;;  %s666_s18 = smov [#allocation6]   ;;  %s667_s20 = smov [#allocation3]  }
   0x4   :  { %s34_s19 = sshll.u32 %s666_s18, 4  ;;  %s19_s21 = sshll.u32 %s667_s20, 4  ;;  %s35_s19 = int_to_ptr.vmem [resolvable:$true] %s34_s19  ;;  %s706_s21 = int_to_ptr.vmem [resolvable:$true] %s19_s21 }
   0x5   :  { %s548_s24 = scalar_lea.hbm %s823_s1, 512 }
   0x6   :  { %p549_p0 = scmp.ne.s32.totalorder %s823_s1, %s548_s24  ;;  %p552_p1 = scmp.lt.u32.totalorder %s548_s24, %s823_s1 }
   0x8   :  { %p554_p2 = pnand %p552_p1, %p549_p0 }
   0xa   :  { %557 = shalt.err (!%p554_p2)
}
   0xb   :  { %s558_s29 = scalar_lea.vmem %s35_s19, 512  ;;  %p563_p4 = scmp.lt.s32.totalorder %s35_s19, %s35_s19 }
   0xc   :  { %p559_p3 = scmp.ne.s32.totalorder %s35_s19, %s558_s29  ;;  %p564_p5 = scmp.lt.s32.totalorder %s558_s29, %s558_s29 }
   0xe   :  { %p565_p6 = por %p564_p5, %p563_p4 }
  0x10   :  { %p566_p7 = pnand %p565_p6, %p559_p3 }
  0x12   :  { %569 = shalt.err (!%p566_p7)
}
  0x13   :  { %s668_s30 = smov 128   ;;  %s669_s6 = smov 8  }
  0x14   :  { %40 = dma.hbm_to_vmem [thread:$0]  %s823_s1, 512, %s35_s19, [#allocation7], %s668_s30, %s668_s30, %s669_s6  }
  0x15   :  { %s570_s11 = scalar_lea.hbm %s822_s0, 384 }
  0x16   :  { %p571_p8 = scmp.ne.s32.totalorder %s822_s0, %s570_s11  ;;  %p574_p9 = scmp.lt.u32.totalorder %s570_s11, %s822_s0 }
  0x18   :  { %p576_p10 = pnand %p574_p9, %p571_p8 }
  0x1a   :  { %579 = shalt.err (!%p576_p10)
}
  0x1b   :  { %s580_s16 = scalar_lea.vmem %s706_s21, 384  ;;  %p585_p12 = scmp.lt.s32.totalorder %s706_s21, %s706_s21 }
  0x1c   :  { %p581_p11 = scmp.ne.s32.totalorder %s706_s21, %s580_s16  ;;  %p586_p13 = scmp.lt.s32.totalorder %s580_s16, %s580_s16 }
  0x1e   :  { %p587_p0 = por %p586_p13, %p585_p12 }
  0x20   :  { %p588_p1 = pnand %p587_p0, %p581_p11 }
  0x22   :  { %591 = shalt.err (!%p588_p1)
}
  0x23   :  { %25 = dma.hbm_to_vmem [thread:$0]  %s822_s0, 384, %s706_s21, [#allocation4], %s668_s30, %s668_s30, %s669_s6  }
  0x24   :  { %s670_s18 = smov [#allocation8]   ;;  %s671_s20 = smov [#allocation9]  }
  0x25   :  { %s49_s19 = sshll.u32 %s670_s18, 4  ;;  %s64_s22 = sshll.u32 %s671_s20, 4  ;;  %s50_s19 = int_to_ptr.vmem [resolvable:$true] %s49_s19  ;;  %s743_s22 = int_to_ptr.vmem [resolvable:$true] %s64_s22 }
  0x26   :  { %s592_s25 = scalar_lea.hbm %s824_s2, 512 }
  0x27   :  { %p593_p2 = scmp.ne.s32.totalorder %s824_s2, %s592_s25  ;;  %p596_p3 = scmp.lt.u32.totalorder %s592_s25, %s824_s2 }
  0x29   :  { %p598_p4 = pnand %p596_p3, %p593_p2 }
  0x2b   :  { %601 = shalt.err (!%p598_p4)
}
  0x2c   :  { %s602_s0 = scalar_lea.vmem %s50_s19, 512  ;;  %p607_p6 = scmp.lt.s32.totalorder %s50_s19, %s50_s19 }
  0x2d   :  { %p603_p5 = scmp.ne.s32.totalorder %s50_s19, %s602_s0  ;;  %p608_p7 = scmp.lt.s32.totalorder %s602_s0, %s602_s0 }
  0x2f   :  { %p609_p8 = por %p608_p7, %p607_p6 }
  0x31   :  { %p610_p9 = pnand %p609_p8, %p603_p5 }
  0x33   :  { %613 = shalt.err (!%p610_p9)
}
  0x34   :  { %55 = dma.hbm_to_vmem [thread:$0]  %s824_s2, 512, %s50_s19, [#allocation7], %s668_s30, %s668_s30, %s669_s6  }
  0x35   :  { %s614_s10 = scalar_lea.hbm %s825_s3, 512 }
  0x36   :  { %p615_p10 = scmp.ne.s32.totalorder %s825_s3, %s614_s10  ;;  %p618_p11 = scmp.lt.u32.totalorder %s614_s10, %s825_s3 }
  0x38   :  { %p620_p12 = pnand %p618_p11, %p615_p10 }
  0x3a   :  { %623 = shalt.err (!%p620_p12)
}
  0x3b   :  { %s624_s15 = scalar_lea.vmem %s743_s22, 512  ;;  %p629_p0 = scmp.lt.s32.totalorder %s743_s22, %s743_s22 }
  0x3c   :  { %p625_p13 = scmp.ne.s32.totalorder %s743_s22, %s624_s15  ;;  %p630_p1 = scmp.lt.s32.totalorder %s624_s15, %s624_s15 }
  0x3e   :  { %p631_p2 = por %p630_p1, %p629_p0 }
  0x40   :  { %p632_p3 = pnand %p631_p2, %p625_p13 }
  0x42   :  { %635 = shalt.err (!%p632_p3)
}
  0x43   :  { %70 = dma.hbm_to_vmem [thread:$0]  %s825_s3, 512, %s743_s22, [#allocation10], %s668_s30, %s668_s30, %s669_s6  }
  0x44   :  { %658 = dma.done.wait [#allocation4], 384  }
  0x45   :  { %659 = vsyncadd [#allocation4], 4294966912 }
  0x46   :  { %660 = dma.done.wait [#allocation7], 1024  }
  0x47   :  { %661 = vsyncadd [#allocation7], 4294966272 }
  0x48   :  { %662 = dma.done.wait [#allocation10], 512  }
  0x49   :  { %663 = vsyncadd [#allocation10], 4294966784  ;;  %v672_v0 = vmov 0.0|0.0   ;;  %vm673_vm0 = vmmov 0   ;;  %v674_v1 = vmov 0.0   ;;  %v126_v2 = vlaneseq  ;;  %v113_v4 = vld [vmem:[#allocation6] sm:$0xff] }
  0x4a   :  { %516 = vmatprep.subr.bf16.mxu0 %v672_v0  ;;  %491 = vmatprep.mubr.msk.f32.mxu0 %vm673_vm0, %v674_v1  ;;  %v114_v5 = vld [vmem:[#allocation6 + $0x8] sm:$0xff]  ;;  %v117_v6 = vld [vmem:[#allocation8] sm:$0xff]  ;;  %v336_v12 = vmul.f32 %v113_v4, %v113_v4  ;;  %v115_v20 = vld [vmem:[#allocation6 + $0x10] sm:$0xff]  ;;  %vm140_vm1 = vcmask 261120  }
  0x4b   :  { %522 = vmatprep.subr.bf16.mxu1 %v672_v0  ;;  %502 = vmatprep.mubr.msk.f32.mxu1 %vm673_vm0, %v674_v1  ;;  %v786_v3 = vshrl.u32 %v126_v2, 7  ;;  %v118_v9 = vld [vmem:[#allocation8 + $0x8] sm:$0xff]  ;;  %v121_v10 = vld [vmem:[#allocation9] sm:$0xff]  ;;  %v337_v13 = vmul.f32 %v114_v5, %v114_v5  ;;  %v340_v14 = vmul.f32 %v117_v6, %v117_v6  ;;  %v116_v21 = vld [vmem:[#allocation6 + $0x18] sm:$0xff]  ;;  %v338_v28 = vmul.f32 %v115_v20, %v115_v20 }
  0x4c   :  { %v122_v11 = vld [vmem:[#allocation9 + $0x8] sm:$0xff]  ;;  %v132_v16 = vsub.f32 %v117_v6, %v121_v10  ;;  %v341_v18 = vmul.f32 %v118_v9, %v118_v9  ;;  %v348_v19 = vmul.f32 %v121_v10, %v121_v10  ;;  %v119_v22 = vld [vmem:[#allocation8 + $0x10] sm:$0xff]  ;;  %v120_v25 = vld [vmem:[#allocation8 + $0x18] sm:$0xff]  ;;  %v339_v29 = vmul.f32 %v116_v21, %v116_v21 }
  0x4d   :  { %v233_v7 = vsub.s32 4, %v786_v3  ;;  %v241_v8 = vsub.s32 5, %v786_v3  ;;  %v253_v15 = vsub.s32 6, %v786_v3  ;;  %v133_v17 = vsub.f32 %v118_v9, %v122_v11  ;;  %v123_v26 = vld [vmem:[#allocation9 + $0x10] sm:$0xff]  ;;  %v124_v27 = vld [vmem:[#allocation9 + $0x18] sm:$0xff]  ;;  %v794_v34 = vld [vmem:[%s826_s4] sm:$0xff] }
  0x4e   :  { %v344_v23 = vadd.f32 %v340_v14, %v336_v12  ;;  %v349_v24 = vmul.f32 %v122_v11, %v122_v11  ;;  %v136_v30 = vmul.f32 %v132_v16, %v113_v4  ;;  %v345_v32 = vadd.f32 %v341_v18, %v337_v13  ;;  %v110_v63 = vld [vmem:[#allocation3] sm:$0xff]  ;;  %v112_v18 = vld [vmem:[#allocation3 + $0x10] sm:$0xff]  ;;  %s675_s4 = smov [#allocation11]  }
  0x4f   :  { %v137_v31 = vmul.f32 %v133_v17, %v114_v5  ;;  %v134_v33 = vsub.f32 %v119_v22, %v123_v26  ;;  %v135_v35 = vsub.f32 %v120_v25, %v124_v27  ;;  %v342_v36 = vmul.f32 %v119_v22, %v119_v22  ;;  %v111_v17 = vld [vmem:[#allocation3 + $0x8] sm:$0xff]  ;;  %s448_s6 = sshll.u32 %s675_s4, 4  ;;  %s449_s6 = int_to_ptr.vmem [resolvable:$true] %s448_s6 }
  0x50   :  { %v343_v37 = vmul.f32 %v120_v25, %v120_v25  ;;  %v234_v38 = vrot.slane %v794_v34, %v233_v7  ;;  %v242_v41 = vrot.slane %v794_v34, %v241_v8  ;;  %v254_v42 = vrot.slane %v794_v34, %v253_v15  ;;  %s636_s1 = scalar_lea.vmem %s449_s6, 128  ;;  %p641_p5 = scmp.lt.s32.totalorder %s449_s6, %s449_s6 }
  0x51   :  { %v517_v39 = vpack.c.bf16 %v137_v31, %v136_v30  ;;  %v138_v40 = vmul.f32 %v134_v33, %v115_v20  ;;  %v139_v43 = vmul.f32 %v135_v35, %v116_v21  ;;  %v352_v46 = vadd.f32 %v348_v19, %v344_v23  ;;  %p637_p4 = scmp.ne.s32.totalorder %s449_s6, %s636_s1  ;;  %p642_p6 = scmp.lt.s32.totalorder %s636_s1, %s636_s1 }
  0x52   :  { %v235_v44 = vmul.f32 %v234_v38, %v113_v4  ;;  %v236_v45 = vmul.f32 %v234_v38, %v114_v5  ;;  %v243_v47 = vmul.f32 %v242_v41, %v117_v6  ;;  %v244_v48 = vmul.f32 %v242_v41, %v118_v9 }
  0x53   :  { %518 = vmatpush3.bf16.msra.mxu0 %v517_v39  ;;  %v255_v49 = vmul.f32 %v254_v42, %v121_v10  ;;  %v256_v50 = vmul.f32 %v254_v42, %v122_v11  ;;  %v520_v51 = vpack.c.bf16 %v139_v43, %v138_v40  ;;  %v353_v52 = vadd.f32 %v349_v24, %v345_v32  ;;  %p643_p7 = por %p642_p6, %p641_p5 }
  0x54   :  { %519 = vmatprep.subr.bf16.mxu0 %v672_v0  ;;  %v237_v53 = vmul.f32 %v234_v38, %v115_v20  ;;  %v238_v54 = vmul.f32 %v234_v38, %v116_v21  ;;  %v247_v55 = vadd.f32 %v243_v47, %v235_v44  ;;  %v248_v56 = vadd.f32 %v244_v48, %v236_v45 }
  0x55   :  { %v245_v57 = vmul.f32 %v242_v41, %v119_v22  ;;  %v246_v58 = vmul.f32 %v242_v41, %v120_v25  ;;  %v529_v59 = vpack.c.bf16 %v353_v52, %v352_v46  ;;  %v257_v60 = vmul.f32 %v254_v42, %v123_v26  ;;  %p644_p8 = pnand %p643_p7, %p637_p4 }
  0x56   :  { %v258_v61 = vmul.f32 %v254_v42, %v124_v27  ;;  %v346_v62 = vadd.f32 %v342_v36, %v338_v28  ;;  %v259_v2 = vadd.f32 %v255_v49, %v247_v55  ;;  %v260_v4 = vadd.f32 %v256_v50, %v248_v56 }
  0x57   :  { %521 = vmatpush3.bf16.msra.mxu0 %v520_v51  ;;  %v249_v5 = vadd.f32 %v245_v57, %v237_v53  ;;  %v250_v6 = vadd.f32 %v246_v58, %v238_v54  ;;  %v347_v7 = vadd.f32 %v343_v37, %v339_v29  ;;  %v350_v8 = vmul.f32 %v123_v26, %v123_v26 }
  0x58   :  { %528 = vmatprep.subr.bf16.mxu0 %v672_v0  ;;  %v351_v9 = vmul.f32 %v124_v27, %v124_v27  ;;  %v523_v10 = vpack.c.bf16 %v260_v4, %v259_v2  ;;  %vm128_vm3 = vcmp.lt.s32.totalorder %v786_v3, 4 }
  0x59   :  { %v261_v11 = vadd.f32 %v257_v60, %v249_v5  ;;  %v262_v12 = vadd.f32 %v258_v61, %v250_v6  ;;  %v354_v13 = vadd.f32 %v350_v8, %v346_v62  ;;  %v131_v40 = vsel %vm128_vm3, %v794_v34, 0.0 }
  0x5a   :  { %492 = vmatmul.mubr.msk.f32.vlgmr.msra.gmra.mrb[0].mxu0 %vm140_vm1, %v110_v63  ;;  %v355_v14 = vadd.f32 %v351_v9, %v347_v7  ;;  %524 = vmatpush3.bf16.msra.mxu1 %v523_v10 }
  0x5b   :  { %530 = vmatpush3.bf16.msra.mxu0 %v529_v59  ;;  %v526_v15 = vpack.c.bf16 %v262_v12, %v261_v11  ;;  %525 = vmatprep.subr.bf16.mxu1 %v672_v0 }
  0x5c   :  { %531 = vmatprep.subr.bf16.mxu0 %v672_v0  ;;  %v532_v16 = vpack.c.bf16 %v355_v14, %v354_v13  ;;  %513 = vmatprep.mubr.msk.f32.mxu0 %vm673_vm0, %v674_v1 }
  0x5e   :  { %527 = vmatpush3.bf16.msra.mxu1 %v526_v15 }
  0x5f   :  { %533 = vmatpush3.bf16.msra.mxu0 %v532_v16 }
  0x61   :  { %503 = vmatmul.mubr.msk.f32.vlgmr.msra.gmra.mrb[0].mxu1 %vm140_vm1, %v111_v17 }
  0x62   :  { %514 = vmatmul.mubr.msk.f32.vlgmr.msra.gmra.mrb[2].mxu0 %vm140_vm1, %v112_v18 }
 0x12d   :  { %v210_v19 = vpop.f32.mrb[0].mxu0 }
 0x12e   :  { %v216_v20 = vand.u32 2147483647, %v210_v19  ;;  %v493_v21 = vpop.f32.mrb[1].mxu0  ;;  %v214_v31 = vsub.f32 0.0, %v210_v19 }
 0x130   :  { %v217_v22 = vsub.f32 0.0, %v216_v20  ;;  %v215_v37 = vmax.f32 %v214_v31, 0.0 }
 0x132   :  { %v218_v23 = vmul.f32 1.442695, %v217_v22 }
 0x134   :  { %544 = vpow2.f32 %v218_v23  ;;  %v332_v24 = vpop.f32.mrb[0].mxu1 }
 0x135   :  { %v425_v0 = vpop.f32.mrb[2].mxu0  ;;  %v504_v26 = vpop.f32.mrb[1].mxu1 }
 0x136   :  { %v430_v25 = vsub.f32 %v425_v0, %v332_v24  ;;  %v515_v27 = vpop.f32.mrb[3].mxu0 }
 0x13e   :  { %v545_v1 = vpop.eup %544 }
 0x13f   :  { %v220_v28 = vadd.f32 1.0, %v545_v1  ;;  %v223_v29 = vmul.f32 -0.5, %v545_v1  ;;  %v226_v32 = vand.u32 2147483647, %v545_v1 }
 0x141   :  { %546 = vlog2.f32 %v220_v28  ;;  %v224_v30 = vadd.f32 1.0, %v223_v29  ;;  %vm227_vm2 = vcmp.lt.f32.partialorder %v226_v32, 0.0004427343 }
 0x143   :  { %v225_v36 = vmul.f32 %v545_v1, %v224_v30 }
 0x14b   :  { %v547_v33 = vpop.eup %546 }
 0x14c   :  { %v222_v35 = vmul.f32 0.6931472, %v547_v33 }
 0x14e   :  { %v228_v38 = vsel %vm227_vm2, %v225_v36, %v222_v35 }
 0x14f   :  { %v229_v39 = vadd.f32 %v228_v38, %v215_v37 }
 0x151   :  { %v230_v41 = vsub.f32 0.0, %v229_v39 }
 0x153   :  { %v431_v42 = vmul.f32 %v230_v41, %v131_v40 }
 0x155   :  { %v432_v43 = vsub.f32 %v430_v25, %v431_v42 }
 0x157   :  { %439 = vadd.xlane.f32.xlu0 %v432_v43 }
 0x1e4   :  { %v440_v44 = vpop.xlane.xlu0 %439 }
 0x1e5   :  { %441 = vst [vmem:[#allocation11] sm:$0xff] %v440_v44 }
 0x1e6   :  { %647 = shalt.err (!%p644_p8)
}
 0x1e7   :  { %s648_s19 = scalar_lea.hbm %s827_s5, 128 }
 0x1e8   :  { %p649_p9 = scmp.ne.s32.totalorder %s827_s5, %s648_s19  ;;  %p652_p10 = scmp.lt.u32.totalorder %s648_s19, %s827_s5 }
 0x1ea   :  { %p654_p11 = pnand %p652_p10, %p649_p9 }
 0x1ec   :  { %657 = shalt.err (!%p654_p11)
}
 0x1ed   :  { %451 = dma.vmem_to_hbm [thread:$0]  %s449_s6, 128, %s827_s5, [#allocation5]  }
 0x1ee   :  { %664 = dma.done.wait [#allocation5], 128  }
 0x1ef   :  { %665 = vsyncadd [#allocation5], 4294967168 }
 0x1f0   :  { %455 = vsyncpa [#allocation4], 1 }
 0x1f1   :  { %456 = vsyncpa [#allocation7], 1 }
 0x1f2   :  { %457 = vsyncpa [#allocation10], 1 }
 0x1f3   :  { %458 = vsyncpa [#allocation5], 1 }

</bundles_post_ra>
